<compile_context>
chip_gen: v7x
topology: tpu7x:2x2x1
jax: 0.10.0
libtpu: 0.0.40
codegen_flags: <defaults>
</compile_context>

<pallas_src>
import functools
import math

import jax
import jax.numpy as jnp
from jax import lax
from jax.experimental import pallas as pl
from jax.experimental.pallas import tpu as pltpu

NUM_HEADS = 8


def _attn_kernel(x_ref, wqkv_ref, bqkv_ref, *out_refs, head_dim):
    # Grid step = (batch b, head h).
    #   x_ref:    (1, S, hidden)      bf16   current batch's activations
    #   wqkv_ref: (1, hidden, 3*Dh)   bf16   this head's fused Q|K|V weights
    #   bqkv_ref: (1, 1, 3*Dh)        f32    this head's fused biases
    #   out_refs: ctx_ref (1, 1, S, Dh) [, probs_ref (1, 1, S, S)]
    ctx_ref = out_refs[0]
    probs_ref = out_refs[1] if len(out_refs) > 1 else None

    Dh = head_dim
    x = x_ref[0]        # (S, hidden) bf16
    w = wqkv_ref[0]     # (hidden, 3*Dh) bf16
    b = bqkv_ref[0]     # (1, 3*Dh) f32

    # Per-head fused QKV projection: one lane-dense MXU matmul, f32 accum.
    qkv = jnp.dot(x, w, preferred_element_type=jnp.float32) + b   # (S, 3*Dh) f32

    # Fold 1/sqrt(Dh) into q; cast Q/K/V to bf16 once and drop the f32 copy.
    q = (qkv[:, 0:Dh] * (1.0 / math.sqrt(Dh))).astype(jnp.bfloat16)   # (S, Dh)
    k = qkv[:, Dh:2 * Dh].astype(jnp.bfloat16)                        # (S, Dh)
    v = qkv[:, 2 * Dh:3 * Dh].astype(jnp.bfloat16)                    # (S, Dh)

    # scores = q @ k^T (contraction over Dh), f32 accumulation on the MXU.
    scores = lax.dot_general(
        q, k, (((1,), (1,)), ((), ())),
        preferred_element_type=jnp.float32)                           # (S, S) f32

    # TODO(synk): attention_mask (additive) / head_mask hooks not implemented
    # (module defaults are None).

    # Numerically-stable softmax, all in f32 (v5e-safe); divide goes to EUP.
    m = jnp.max(scores, axis=-1, keepdims=True)
    e = jnp.exp(scores - m)
    inv = pl.reciprocal(jnp.sum(e, axis=-1, keepdims=True), approx=True)
    probs = e * inv                                                   # (S, S) f32

    # TODO(synk): training-mode dropout on probs would use pltpu.prng_seed +
    # pltpu.stateful_bernoulli; inference path (identity) is implemented.
    if probs_ref is not None:
        probs_ref[0, 0] = probs.astype(probs_ref.dtype)

    ctx = jnp.dot(probs.astype(jnp.bfloat16), v,
                  preferred_element_type=jnp.float32)                 # (S, Dh) f32
    ctx_ref[0, 0] = ctx.astype(ctx_ref.dtype)


def inner_self_attention(hidden_states, wq, wk, wv, bq, bk, bv,
                         num_heads=NUM_HEADS, output_attentions=True):
    """hidden_states: (B, S, hidden); w*: (hidden, hidden) in x@W layout; b*: (hidden,)."""
    B, S, hidden = hidden_states.shape
    assert hidden % num_heads == 0, "hidden_size must be divisible by num_heads"
    Dh = hidden // num_heads
    out_dtype = hidden_states.dtype

    # Host-side per-head fused weight layout: (H, hidden, 3*Dh), bf16 MXU operands.
    def per_head_w(w):   # (hidden, hidden) -> (H, hidden, Dh)
        return w.reshape(hidden, num_heads, Dh).transpose(1, 0, 2)

    def per_head_b(b):   # (hidden,) -> (H, 1, Dh)
        return b.reshape(num_heads, 1, Dh)

    wqkv = jnp.concatenate(
        [per_head_w(wq), per_head_w(wk), per_head_w(wv)],
        axis=-1).astype(jnp.bfloat16)                      # (H, hidden, 3*Dh)
    bqkv = jnp.concatenate(
        [per_head_b(bq), per_head_b(bk), per_head_b(bv)],
        axis=-1).astype(jnp.float32)                       # (H, 1, 3*Dh)
    x = hidden_states.astype(jnp.bfloat16)                 # (B, S, hidden)

    # TODO(synk): for Dh < 128 the per-head MXU matmuls use only Dh of the
    # 256-wide v6e/v7x MXU; zero-padding each head's columns to 128 in wqkv
    # would raise MXU utilization at the cost of padded compute.

    x_spec = pl.BlockSpec((1, S, hidden), lambda b, h: (b, 0, 0))
    w_spec = pl.BlockSpec((1, hidden, 3 * Dh), lambda b, h: (h, 0, 0))
    b_spec = pl.BlockSpec((1, 1, 3 * Dh), lambda b, h: (h, 0, 0))
    ctx_spec = pl.BlockSpec((1, 1, S, Dh), lambda b, h: (b, h, 0, 0))

    out_shape = (jax.ShapeDtypeStruct((B, num_heads, S, Dh), out_dtype),)
    out_specs = [ctx_spec]
    if output_attentions:
        out_shape = out_shape + (
            jax.ShapeDtypeStruct((B, num_heads, S, S), out_dtype),)
        out_specs = out_specs + [
            pl.BlockSpec((1, 1, S, S), lambda b, h: (b, h, 0, 0))]

    # Explicit VMEM budget from the actual (double-buffered) block sizes.
    osz = jnp.dtype(out_dtype).itemsize
    block_bytes = (S * hidden * 2                 # x (bf16)
                   + hidden * 3 * Dh * 2          # per-head weights (bf16)
                   + 3 * Dh * 4                   # per-head bias (f32)
                   + S * Dh * osz                 # ctx block
                   + (S * S * osz if output_attentions else 0))   # probs block
    interm_bytes = (S * 3 * Dh * 4                # qkv f32
                    + 4 * S * S * 4               # scores / e / probs / temps f32
                    + 3 * S * Dh * 4)             # q/k/v + ctx temps
    vmem_limit = int(min(64 << 20, max(16 << 20, 2 * (2 * block_bytes + interm_bytes))))

    flops = (2 * B * S * hidden * 3 * hidden           # QKV projection (all heads)
             + 4 * B * num_heads * S * S * Dh)         # QK^T + probs@V
    bytes_accessed = (x.size * 2 + wqkv.size * 2 + bqkv.size * 4
                      + B * S * hidden * osz
                      + (B * num_heads * S * S * osz if output_attentions else 0))
    cost = pl.CostEstimate(flops=int(flops),
                           transcendentals=int(B * num_heads * S * S),
                           bytes_accessed=int(bytes_accessed))

    kernel = functools.partial(_attn_kernel, head_dim=Dh)

    outs = pl.pallas_call(
        kernel,
        out_shape=out_shape,
        grid_spec=pltpu.PrefetchScalarGridSpec(
            num_scalar_prefetch=0,
            grid=(B, num_heads),
            in_specs=[x_spec, w_spec, b_spec],
            out_specs=out_specs),
        compiler_params=pltpu.CompilerParams(
            dimension_semantics=("parallel", "parallel"),
            vmem_limit_bytes=vmem_limit),
        cost_estimate=cost,
    )(x, wqkv, bqkv)

    ctx = outs[0]                                   # (B, H, S, Dh)
    # torch: permute(0, 2, 1, 3).contiguous().view(B, S, H*Dh)
    context = ctx.transpose(0, 2, 1, 3).reshape(B, S, hidden)
    probs = outs[1] if output_attentions else None
    return context, probs


def _reference(hidden_states, wq, wk, wv, bq, bk, bv, num_heads=NUM_HEADS):
    B, S, hidden = hidden_states.shape
    Dh = hidden // num_heads

    def split(t):  # (B, S, hidden) -> (B, H, S, Dh)
        return t.reshape(B, S, num_heads, Dh).transpose(0, 2, 1, 3)

    q = split(hidden_states @ wq + bq)
    k = split(hidden_states @ wk + bk)
    v = split(hidden_states @ wv + bv)
    scores = jnp.einsum("bhqd,bhkd->bhqk", q, k) / math.sqrt(Dh)
    probs = jax.nn.softmax(scores, axis=-1)
    ctx = jnp.einsum("bhqk,bhkd->bhqd", probs, v)
    ctx = ctx.transpose(0, 2, 1, 3).reshape(B, S, hidden)
    return ctx, probs


if __name__ == "__main__":
    B, S, hidden = 2, 8, 32   # hidden_size=32 -> 8 heads x head_size 4
    key = jax.random.PRNGKey(0)
    kx, kwq, kwk, kwv, kbq, kbk, kbv = jax.random.split(key, 7)

    x = jax.random.normal(kx, (B, S, hidden), dtype=jnp.float32)
    scale = 1.0 / math.sqrt(hidden)
    wq = jax.random.uniform(kwq, (hidden, hidden), jnp.float32, -scale, scale)
    wk = jax.random.uniform(kwk, (hidden, hidden), jnp.float32, -scale, scale)
    wv = jax.random.uniform(kwv, (hidden, hidden), jnp.float32, -scale, scale)
    bq = jax.random.uniform(kbq, (hidden,), jnp.float32, -scale, scale)
    bk = jax.random.uniform(kbk, (hidden,), jnp.float32, -scale, scale)
    bv = jax.random.uniform(kbv, (hidden,), jnp.float32, -scale, scale)

    context, probs = inner_self_attention(x, wq, wk, wv, bq, bk, bv,
                                          output_attentions=True)
    jax.block_until_ready((context, probs))

    ref_ctx, ref_probs = _reference(x, wq, wk, wv, bq, bk, bv)
    assert context.shape == (B, S, hidden)
    assert probs.shape == (B, NUM_HEADS, S, S)
    # bf16 MXU operands with f32 accumulation + approx reciprocal -> relaxed tol.
    assert jnp.allclose(context, ref_ctx, atol=2e-2, rtol=2e-2)
    assert jnp.allclose(probs, ref_probs, atol=2e-2, rtol=2e-2)

    print("KERNEL_OK")
</pallas_src>

<mosaic_0001>
module attributes {stable_mosaic.version = 11 : i64} {
  func.func @_attn_kernel(%arg0: i32, %arg1: i32, %arg2: memref<1x8x32xbf16, #tpu.memory_space<vmem>>, %arg3: memref<1x32x12xbf16, #tpu.memory_space<vmem>>, %arg4: memref<1x1x12xf32, #tpu.memory_space<vmem>>, %arg5: memref<1x1x8x4xf32, #tpu.memory_space<vmem>>, %arg6: memref<1x1x8x8xf32, #tpu.memory_space<vmem>>) attributes {dimension_semantics = [#tpu.dimension_semantics<parallel>, #tpu.dimension_semantics<parallel>], iteration_bounds = array<i64: 2, 8>, scalar_prefetch = 0 : i64, scratch_operands = 0 : i64, tpu.core_type = #tpu.core_type<tc>, window_params = [{transform_indices = @transform_0, window_bounds = array<i64: 1, 8, 32>}, {transform_indices = @transform_1, window_bounds = array<i64: 1, 32, 12>}, {transform_indices = @transform_2, window_bounds = array<i64: 1, 1, 12>}, {transform_indices = @transform_3, window_bounds = array<i64: 1, 1, 8, 4>}, {transform_indices = @transform_4, window_bounds = array<i64: 1, 1, 8, 8>}]} {
    %c0 = arith.constant 0 : index
    %c0_0 = arith.constant 0 : index
    %c0_1 = arith.constant 0 : index
    %0 = vector.load %arg2[%c0, %c0_0, %c0_1] : memref<1x8x32xbf16, #tpu.memory_space<vmem>>, vector<1x8x32xbf16>
    %1 = vector.shape_cast %0 : vector<1x8x32xbf16> to vector<8x32xbf16>
    %c0_2 = arith.constant 0 : index
    %c0_3 = arith.constant 0 : index
    %c0_4 = arith.constant 0 : index
    %2 = vector.load %arg3[%c0_2, %c0_3, %c0_4] : memref<1x32x12xbf16, #tpu.memory_space<vmem>>, vector<1x32x12xbf16>
    %3 = vector.shape_cast %2 : vector<1x32x12xbf16> to vector<32x12xbf16>
    %c0_5 = arith.constant 0 : index
    %c0_6 = arith.constant 0 : index
    %c0_7 = arith.constant 0 : index
    %4 = vector.load %arg4[%c0_5, %c0_6, %c0_7] : memref<1x1x12xf32, #tpu.memory_space<vmem>>, vector<1x1x12xf32>
    %5 = vector.shape_cast %4 : vector<1x1x12xf32> to vector<1x12xf32>
    %cst = arith.constant dense<0.000000e+00> : vector<8x12xf32>
    %6 = tpu.matmul %1, %3, %cst {dimension_numbers = #tpu.dot_dimension_numbers<[1], [0], [0], [1], [0, 0, 1, 1], [], []>} : vector<8x32xbf16>, vector<32x12xbf16>, vector<8x12xf32> -> vector<8x12xf32>
    %7 = vector.broadcast %5 : vector<1x12xf32> to vector<8x12xf32>
    %8 = arith.addf %6, %7 : vector<8x12xf32>
    %9 = vector.extract_strided_slice %8 {offsets = [0, 0], sizes = [8, 4], strides = [1, 1]} : vector<8x12xf32> to vector<8x4xf32>
    %cst_8 = arith.constant 5.000000e-01 : f32
    %10 = vector.broadcast %cst_8 : f32 to vector<8x4xf32>
    %11 = arith.mulf %9, %10 : vector<8x4xf32>
    %12 = arith.truncf %11 : vector<8x4xf32> to vector<8x4xbf16>
    %13 = vector.extract_strided_slice %8 {offsets = [0, 4], sizes = [8, 4], strides = [1, 1]} : vector<8x12xf32> to vector<8x4xf32>
    %14 = arith.truncf %13 : vector<8x4xf32> to vector<8x4xbf16>
    %15 = vector.extract_strided_slice %8 {offsets = [0, 8], sizes = [8, 4], strides = [1, 1]} : vector<8x12xf32> to vector<8x4xf32>
    %16 = arith.truncf %15 : vector<8x4xf32> to vector<8x4xbf16>
    %cst_9 = arith.constant dense<0.000000e+00> : vector<8x8xf32>
    %17 = tpu.matmul %12, %14, %cst_9 {dimension_numbers = #tpu.dot_dimension_numbers<[1], [1], [0], [0], [0, 0, 1, 0], [], []>} : vector<8x4xbf16>, vector<8x4xbf16>, vector<8x8xf32> -> vector<8x8xf32>
    %cst_10 = arith.constant dense<0xFF800000> : vector<8xf32>
    %18 = vector.multi_reduction <maximumf>, %17, %cst_10 [1] : vector<8x8xf32> to vector<8xf32>
    %19 = vector.shape_cast %18 : vector<8xf32> to vector<8x1xf32>
    %20 = vector.broadcast %19 : vector<8x1xf32> to vector<8x8xf32>
    %21 = arith.subf %17, %20 : vector<8x8xf32>
    %22 = math.exp %21 : vector<8x8xf32>
    %cst_11 = arith.constant dense<0.000000e+00> : vector<8xf32>
    %23 = vector.multi_reduction <add>, %22, %cst_11 [1] : vector<8x8xf32> to vector<8xf32>
    %24 = vector.shape_cast %23 : vector<8xf32> to vector<8x1xf32>
    %25 = tpu.reciprocal %24 {approx = true} : vector<8x1xf32> -> vector<8x1xf32>
    %26 = vector.broadcast %25 : vector<8x1xf32> to vector<8x8xf32>
    %27 = arith.mulf %22, %26 : vector<8x8xf32>
    %c0_12 = arith.constant 0 : index
    %c0_13 = arith.constant 0 : index
    %c0_14 = arith.constant 0 : index
    %c0_15 = arith.constant 0 : index
    %28 = vector.load %arg6[%c0_12, %c0_13, %c0_14, %c0_15] : memref<1x1x8x8xf32, #tpu.memory_space<vmem>>, vector<1x1x8x8xf32>
    %29 = vector.shape_cast %28 : vector<1x1x8x8xf32> to vector<8x8xf32>
    %30 = vector.shape_cast %27 : vector<8x8xf32> to vector<1x1x8x8xf32>
    tpu.vector_store %arg6[%c0_12, %c0_13, %c0_14, %c0_15], %30 {strides = array<i32>} : memref<1x1x8x8xf32, #tpu.memory_space<vmem>>, vector<1x1x8x8xf32>,
    %31 = arith.truncf %27 : vector<8x8xf32> to vector<8x8xbf16>
    %cst_16 = arith.constant dense<0.000000e+00> : vector<8x4xf32>
    %32 = tpu.matmul %31, %16, %cst_16 {dimension_numbers = #tpu.dot_dimension_numbers<[1], [0], [0], [1], [0, 0, 1, 1], [], []>} : vector<8x8xbf16>, vector<8x4xbf16>, vector<8x4xf32> -> vector<8x4xf32>
    %c0_17 = arith.constant 0 : index
    %c0_18 = arith.constant 0 : index
    %c0_19 = arith.constant 0 : index
    %c0_20 = arith.constant 0 : index
    %33 = vector.load %arg5[%c0_17, %c0_18, %c0_19, %c0_20] : memref<1x1x8x4xf32, #tpu.memory_space<vmem>>, vector<1x1x8x4xf32>
    %34 = vector.shape_cast %33 : vector<1x1x8x4xf32> to vector<8x4xf32>
    %35 = vector.shape_cast %32 : vector<8x4xf32> to vector<1x1x8x4xf32>
    tpu.vector_store %arg5[%c0_17, %c0_18, %c0_19, %c0_20], %35 {strides = array<i32>} : memref<1x1x8x4xf32, #tpu.memory_space<vmem>>, vector<1x1x8x4xf32>,
    return
  }
  func.func @transform_0(%arg0: i32, %arg1: i32) -> (i32, i32, i32) {
    %c0_i32 = arith.constant 0 : i32
    %c0_i32_0 = arith.constant 0 : i32
    %c0_i32_1 = arith.constant 0 : i32
    return %arg0, %c0_i32, %c0_i32_0 : i32, i32, i32
  }
  func.func @transform_1(%arg0: i32, %arg1: i32) -> (i32, i32, i32) {
    %c0_i32 = arith.constant 0 : i32
    %c0_i32_0 = arith.constant 0 : i32
    %c0_i32_1 = arith.constant 0 : i32
    return %arg1, %c0_i32, %c0_i32_0 : i32, i32, i32
  }
  func.func @transform_2(%arg0: i32, %arg1: i32) -> (i32, i32, i32) {
    %c0_i32 = arith.constant 0 : i32
    %c0_i32_0 = arith.constant 0 : i32
    %c0_i32_1 = arith.constant 0 : i32
    return %arg1, %c0_i32, %c0_i32_0 : i32, i32, i32
  }
  func.func @transform_3(%arg0: i32, %arg1: i32) -> (i32, i32, i32, i32) {
    %c0_i32 = arith.constant 0 : i32
    %c0_i32_0 = arith.constant 0 : i32
    %c0_i32_1 = arith.constant 0 : i32
    return %arg0, %arg1, %c0_i32, %c0_i32_0 : i32, i32, i32, i32
  }
  func.func @transform_4(%arg0: i32, %arg1: i32) -> (i32, i32, i32, i32) {
    %c0_i32 = arith.constant 0 : i32
    %c0_i32_0 = arith.constant 0 : i32
    %c0_i32_1 = arith.constant 0 : i32
    return %arg0, %arg1, %c0_i32, %c0_i32_0 : i32, i32, i32, i32
  }
}

</mosaic_0001>

<bundles_post_ra>
// kernel: tpu_custom_call.1
= control target key start
LH: loop header
LB: loop body
LE: loop exit
PB: predicated region body
PF: predicated region fallthrough
CT: control target
= control target key end

     0   :  { %s1020_s0 = inlined_call_operand.vmem [shape: bf16[2,8,32], index: 0, kind: input, shape index: {}]   ;;  %s1021_s1 = inlined_call_operand.vmem [shape: bf16[8,32,12], index: 1, kind: input, shape index: {}]   ;;  %s1022_s2 = inlined_call_operand.vmem [shape: f32[8,1,12], index: 2, kind: input, shape index: {}]   ;;  %s1023_s3 = inlined_call_operand.vmem [shape: f32[2,8,8,4], index: 3, kind: output, shape index: {0}]   ;;  %s1024_s4 = inlined_call_operand.hbm [shape: f32[2,8,8,8], index: 4, kind: output, shape index: {1}]  }
   0x1   :  { %1025 = sst [smem:[#allocation5_spill]] %s1020_s0 }
   0x2   :  { %1026 = sst [smem:[#allocation6_spill]] %s1021_s1 }
   0x3   :  { %1027 = sst [smem:[#allocation7_spill]] %s1022_s2 }
   0x4   :  { %10 = vsyncpa [#allocation3], 0 }
   0x5   :  { %12 = vsyncpa [#allocation3 + $0x1], 0  ;;  %s861_s15 = smov 0   ;;  %s863_s16 = smov 0  }
   0x6   :  { %s865_s17 = smov 0   ;;  %s867_s18 = smov 0  }
   0x7   :  { %s869_s19 = smov 0   ;;  %s871_s20 = smov 0  }
   0x8   :  { %s873_s21 = smov 0   ;;  %s875_s22 = smov 0  }
   0x9 LB: > { %s604_s23 = sadd.s32 4294967295, %s829_s22   ;;  %s605_s24 = sadd.s32 4294967294, %s829_s22   ;;  %s829_s22 = sphi %s875_s22, %s18_s22   ;;  %s825_s21 = sphi %s873_s21, %s1039_s21   ;;  %s821_s20 = sphi %s871_s20, %s1038_s20   ;;  %s817_s19 = sphi %s869_s19, %s1037_s19   ;;  %s813_s18 = sphi %s867_s18, %s1036_s18   ;;  %s809_s17 = sphi %s865_s17, %s1035_s17   ;;  %s805_s16 = sphi %s863_s16, %s1034_s16   ;;  %s801_s15 = sphi %s861_s15, %s1033_s15  }
   0xa   : > { %s27_s25 = sadd.s32 1, %s821_s20  ;;  %s30_s26 = sadd.s32 1, %s825_s21 }
   0xb   : > { %p28_p0 = scmp.ge.s32.totalorder %s27_s25, 8  ;;  %p155_p1 = scmp.ne.s32.totalorder %s809_s17, %s805_s16 }
   0xc   : > { %p156_p2 = scmp.eq.s32.totalorder %s604_s23, 15  ;;  %p161_p5 = scmp.ne.s32.totalorder %s805_s16, %s801_s15 }
   0xd   : > { %s1041_s25 = smov (%p28_p0, %s27_s25), 0  ;;  %s1043_s26 = smov (!%p28_p0, %s30_s26), %s825_s21 }
   0xe   : > { %s141_s27 = ssub.s32 %s821_s20, %s1041_s25  ;;  %p912_p3 = por %p156_p2, %p155_p1 }
   0xf   : > { %p32_p4 = scmp.ge.s32.totalorder %s1043_s26, 2  ;;  %p162_p6 = scmp.eq.s32.totalorder %s605_s24, 15 }
  0x10   : > { %p608_p7 = scmp.ge.s32.totalorder %s829_s22, 1  ;;  %p201_p9 = scmp.lt.s32.totalorder %s829_s22, 17 }
  0x11   : > { %s1045_s26 = smov (%p32_p4, %s1043_s26), 0  ;;  %p921_p8 = por %p162_p6, %p161_p5 }
  0x12   : > { %s140_s30 = ssub.s32 %s825_s21, %s1045_s26  ;;  %s145_s5 = sadd.s32 1, %s809_s17 }
  0x13   : > { %s142_s6 = sor.u32 %s141_s27, %s140_s30  ;;  %p202_p10 = pnand %p608_p7, %p201_p9 }
  0x14   : > { %p143_p11 = scmp.eq.s32.totalorder %s142_s6, 0  ;;  %p246_p12 = scmp.lt.s32.totalorder (!%p202_p10), %s813_s18, 7  ;;  %v831_v0 = vmov (!%p202_p10), 0.0   ;;  %vm832_vm0 = vmmov (!%p202_p10), 0   ;;  %vm287_vm1 = vcmask (!%p202_p10), 261120   ;;  %vm337_vm2 = vcmask (!%p202_p10), 31744  }
  0x15   : > { %205 = sbr.rel (%p202_p10) target bundleno = 1122 (0x462), region = 32  ;;  %p242_p13 = scmp.lt.s32.totalorder (!%p202_p10), %s817_s19, 1  ;;  %634 = vmatprep.subr.bf16.mxu0 (!%p202_p10), %v831_v0  ;;  %638 = vmatprep.mubr.msk.bf16.mxu0 (!%p202_p10), %vm832_vm0, %v831_v0  ;;  %vm384_vm3 = vcmask (!%p202_p10), 64512   ;;  %vm403_vm4 = vcmask (!%p202_p10), 1043456  }
  0x16   : > { %s930_s7 = scalar_select %p143_p11, %s809_s17, %s145_s5  }
  0x17   : > { %642 = vmatprep.subr.bf16.mxu1 (!%p202_p10), %v831_v0  ;;  %644 = vmatprep.mubr.msk.bf16.mxu1 (!%p202_p10), %vm832_vm0, %v831_v0  ;;  %s1030_s1 = sld [smem:[#allocation6_spill]] (!%p202_p10)  ;;  %s1031_s0 = sld [smem:[#allocation5_spill]] (!%p202_p10) }
  0x18   : > { %s1032_s2 = sld [smem:[#allocation7_spill]] (!%p202_p10)  ;;  %s834_s11 = smov (!%p202_p10), 120  }
  0x19   : > { %s239_s12 = sand.u32 (!%p202_p10), 1, %s805_s16   ;;  %s622_s23 = sshll.u32 (!%p202_p10), %s817_s19, 3 }
  0x1a   : > { %s471_s24 = sadd.s32 (!%p202_p10), %s813_s18, %s622_s23 }
  0x1c   : > { %s936_s8 = scalar_select %p246_p12, %s813_s18, 7 }
  0x1d   : > { %s940_s9 = scalar_select %p242_p13, %s817_s19, 1 }
  0x1e   : > { %s626_s10 = sshll.u32 %s936_s8, 4  ;;  %s253_s6 = scalar_lea.vmem %s1032_s2, %s936_s8 }
  0x1f   : > { %s250_s13 = scalar_lea.vmem %s1030_s1, %s626_s10  ;;  %s610_s14 = sshll.u32 %s940_s9, 2  ;;  %v615_v4 = vld [vmem:[%s253_s6] ss:$0 sm:$0xff] }
  0x20   : > { %v729_v1 = vld [vmem:[%s250_s13] sm:$0xff]   ;;  %v730_v2 = vld [vmem:[%s250_s13 + $0x8] sm:$0xff]   ;;  %s245_s27 = scalar_lea.vmem %s1031_s0, %s610_s14  ;;  %s833_s10 = smov 124  }
  0x21   : > { %635 = vmatpush3.bf16.msra.mxu0 %v729_v1  ;;  %v263_v3 = vld [vmem:[%s245_s27] sm:$0xf]  ;;  %s609_s13 = sshll.u32 %s239_s12, 3  ;;  %s623_s27 = sshll.u32 %s471_s24, 7 }
  0x22   : > { %636 = vmatprep.subr.bf16.mxu0 %v831_v0  ;;  %s241_s14 = scalar_lea.vmem [#allocation2], %s609_s13  ;;  %s835_s13 = smov [#allocation2]  }
  0x23   : > { %s475_s30 = sshll.u32 %s241_s14, 4  ;;  %s739_s1 = sshll.u32 %s835_s13, 4  ;;  %s476_s30 = int_to_ptr.vmem [resolvable:$true] %s475_s30  ;;  %s740_s1 = int_to_ptr.vmem [resolvable:$false] %s739_s1 }
  0x24   : > { %s735_s0 = scalar_lea.vmem %s476_s30, 128  ;;  %s741_s2 = scalar_lea.vmem %s740_s1, 256 }
  0x25   : > { %637 = vmatpush3.bf16.msra.mxu0 %v730_v2  ;;  %p736_p0 = scmp.ne.s32.totalorder %s476_s30, %s735_s0  ;;  %p742_p4 = scmp.lt.s32.totalorder %s476_s30, %s740_s1 }
  0x26   : > { %648 = vmatprep.subr.bf16.mxu0 %v831_v0  ;;  %p743_p5 = scmp.lt.s32.totalorder %s741_s2, %s735_s0 }
  0x27   : > { %p737_p1 = pnand %p736_p0, %p912_p3 }
  0x28   : > { %639 = vmatmul.mubr.msk.bf16.vlgmr.msra.gmra.mrb[0].mxu0 %vm287_vm1, %v263_v3  ;;  %p744_p6 = por %p743_p5, %p742_p4 }
  0x29   : > { %650 = vmatprep.mubr.msk.bf16.mxu0 %vm832_vm0, %v831_v0  ;;  %p738_p2 = pneg %p737_p1 }
  0x2b   : > { %p745_p7 = pnand %p744_p6, %p738_p2 }
  0xfb   : > { %v325_v5 = vpop.f32.mrb[0].mxu0 }
  0xfc   : > { %v326_v6 = vadd.f32 %v615_v4, %v325_v5  ;;  %v640_v7 = vpop.f32.mrb[1].mxu0 }
  0xfd   : > { %v328_v8 = vpop.f32.mrb[2].mxu0 }
  0xfe   : > { %v641_v9 = vpop.f32.mrb[3].mxu0  ;;  %v333_v10 = vpack.c.bf16 %v326_v6, %v326_v6  ;;  %v331_v13 = vmul.f32 0.5, %v326_v6 }
 0x100   : > { %335 = vrot.lane.b32.xlu0 %v333_v10, %s833_s10  ;;  %v332_v14 = vpack.c.bf16 %v331_v13, %v331_v13  ;;  %s967_s10 = scalar_lea.hbm %s1024_s4, %s623_s27 }
 0x172   : > { %v336_v11 = vpop.permute.xlu0 %335 }
 0x173   : > { %v342_v12 = vsel %vm337_vm2, %v336_v11, 0 }
 0x174   : > { %643 = vmatpush3.bf16.xpose.msra.mxu1 %v342_v12 }
 0x17b   : > { %645 = vmatmul.mubr.msk.bf16.vlgmr.msra.gmra.mrb[0].mxu1 %vm337_vm2, %v332_v14 }
 0x24e   : > { %v378_v15 = vpop.f32.mrb[0].mxu1 }
 0x24f   : > { %v646_v16 = vpop.f32.mrb[1].mxu1  ;;  %v385_v17 = vsel %vm384_vm3, %v378_v15, -inf }
 0x250   : > { %386 = vmax.xlane.f32.xlu0 %v385_v17  ;;  %v381_v18 = vpop.f32.mrb[2].mxu1 }
 0x251   : > { %v647_v19 = vpop.f32.mrb[3].mxu1 }
 0x2dd   : > { %v387_v20 = vpop.xlane.xlu0 %386 }
 0x2de   : > { %v388_v21 = vsub.f32 %v378_v15, %v387_v20 }
 0x2e0   : > { %v389_v22 = vmul.f32 1.442695, %v388_v21 }
 0x2e2   : > { %731 = vpow2.f32 %v389_v22 }
 0x2ec   : > { %v732_v23 = vpop.eup %731 }
 0x2ed   : > { %v391_v24 = vsel %vm384_vm3, %v732_v23, 0.0 }
 0x2ee   : > { %392 = vadd.xlane.f32.xlu1 %v391_v24 }
 0x2ff   : > { %398 = vrot.lane.b32.xlu1 %v333_v10, %s834_s11  ;;  %s457_s11 = scalar_lea.sflag [#allocation3], %s239_s12 }
 0x37b   : > { %v393_v25 = vpop.xlane.xlu1 %392 }
 0x37c   : > { %733 = vrcp.f32 %v393_v25 }
 0x37f   : > { %v399_v26 = vpop.permute.xlu1 %398 }
 0x380   : > { %v405_v27 = vsel %vm403_vm4, %v399_v26, 0 }
 0x381   : > { %649 = vmatpush3.bf16.msra.mxu0 %v405_v27 }
 0x386   : > { %v734_v28 = vpop.eup %733 }
 0x387   : > { %v395_v29 = vmul.f32 %v734_v28, %v732_v23 }
 0x389   : > { %v397_v30 = vpack.c.bf16 %v395_v29, %v395_v29  ;;  %396 = vst.msk [vmem:[%s241_s14] sm:$0xff] %vm384_vm3, %v395_v29 }
 0x38b   : > { %651 = vmatmul.mubr.msk.bf16.vlgmr.msra.gmra.mrb[4].mxu0 %vm384_vm3, %v397_v30 }
 0x38c   : > { %748 = shalt.err (!%p745_p7)
}
 0x38d   : > { %s749_s18 = scalar_lea.hbm %s967_s10, 128  ;;  %s753_s14 = scalar_lea.hbm %s1024_s4, 2048 }
 0x38e   : > { %p750_p9 = scmp.ne.s32.totalorder %s967_s10, %s749_s18  ;;  %p754_p12 = scmp.lt.u32.totalorder %s967_s10, %s1024_s4 }
 0x38f   : > { %p755_p13 = scmp.lt.u32.totalorder %s753_s14, %s749_s18  ;;  %p757_p1 = scmp.lt.u32.totalorder %s749_s18, %s967_s10 }
 0x390   : > { %p751_p10 = pnand %p750_p9, %p912_p3 }
 0x391   : > { %p756_p0 = por %p755_p13, %p754_p12 }
 0x392   : > { %p752_p11 = pneg %p751_p10 }
 0x393   : > { %p758_p2 = por %p757_p1, %p756_p0 }
 0x395   : > { %p759_p4 = pnand %p758_p2, %p752_p11 }
 0x397   : > { %762 = shalt.err (!%p759_p4)
}
 0x398   : > { %654 = dma.vmem_to_hbm [thread:$0]  (%p912_p3), %s476_s30, 128, %s967_s10, %s457_s11  }
 0x399   : > { %s613_s0 = sshll.u32 %s940_s9, 3 }
 0x39a   : > { %s259_s2 = sadd.s32 %s613_s0, %s936_s8 }
 0x39b   : > { %s614_s24 = sshll.u32 %s259_s2, 3 }
 0x39c   : > { %s261_s6 = scalar_lea.vmem %s1023_s3, %s614_s24 }
 0x45e   : > { %v441_v31 = vpop.f32.mrb[4].mxu0 }
 0x45f   : > { %447 = vst.msk [vmem:[%s261_s6] sm:$0xff] %vm337_vm2, %v441_v31  ;;  %v652_v32 = vpop.f32.mrb[5].mxu0 }
 0x460   : > { %v444_v33 = vpop.f32.mrb[6].mxu0 }
 0x461   : > { %v653_v34 = vpop.f32.mrb[7].mxu0 }
 0x462 PF: > { %p660_p5 = scmp.ge.s32.totalorder %s829_s22, 2  ;;  %s498_s28 = sand.u32 1, %s801_s15  }
 0x463   : > { %s499_s8 = scalar_lea.sflag [#allocation3], %s498_s28 }
 0x464   : > { %p657_p3 = pnand %p660_p5, %p921_p8 }
 0x466   : > { %796 = dma.done.wait (!%p657_p3), %s499_s8, 128  }
 0x467   : > { %798 = vsyncadd (!%p657_p3), %s499_s8, 4294967168  ;;  %s18_s22 = sadd.s32 1, %s829_s22   ;;  %s1033_s15 = smov %s805_s16 }
 0x468   : > { %p15_p6 = scmp.ge.s32.totalorder %s18_s22, 18   ;;  %s1034_s16 = smov %s809_s17 }
 0x469   : > { %s1035_s17 = smov %s930_s7  ;;  %s1036_s18 = smov %s821_s20 }
 0x46a   : > { %s1037_s19 = smov %s825_s21  ;;  %s1038_s20 = smov %s1041_s25 }
 0x46b   : > { %s1039_s21 = smov %s1045_s26  ;;  %17 = sbr.rel (!%p15_p6) target bundleno = 9 (0x9), region = 85 }
 0x472   :  { %504 = vsyncpa [#allocation3], 1 }
 0x473   :  { %506 = vsyncpa [#allocation3 + $0x1], 1 }

</bundles_post_ra>
